<compile_context>
chip_gen: v7x
topology: tpu7x:2x2x1
jax: 0.10.0
libtpu: 0.0.40
codegen_flags: <defaults>
</compile_context>

<pallas_src>
from typing import NamedTuple

import jax
import jax.numpy as jnp
from jax.experimental import pallas as pl
from jax.experimental.pallas import tpu as pltpu


def _round_up(x, m):
    return (x + m - 1) // m * m


def _vmem_capacity_bytes():
    try:
        return int(pltpu.get_tpu_info().vmem_capacity_bytes)
    except Exception:
        return 128 << 20


def _num_tensorcores():
    try:
        info = pltpu.get_tpu_info()
        for name in ("num_cores", "num_tensorcores", "tensorcore_count",
                     "num_cores_per_chip", "cores_per_chip"):
            v = getattr(info, name, None)
            if v:
                return int(v)
    except Exception:
        pass
    return 1


def _block_bytes(rows, cols, dtype):
    # account for sublane(8) / lane(128) layout padding of a VMEM block
    return (_round_up(max(rows, 1), 8) * _round_up(max(cols, 1), 128)
            * jnp.dtype(dtype).itemsize)


class SAEParams(NamedTuple):
    w_enc: jax.Array      # (D, Fp)  padded encoder weight (enc.weight.T)
    b_enc: jax.Array      # (1, Fp)
    w_dec: jax.Array      # (Fp, D)  padded decoder weight (dec.weight.T)
    b_dec: jax.Array      # (1, D)
    col_norm: jax.Array   # (1, Fp)  f32  ||decoder.weight||_{dim=0}
    dict_size: int        # original (unpadded) F
    bf: int               # dictionary-dim tile baked into the padding


def prepare_sae_params(w_enc, b_enc, w_dec, b_dec, *, bf=None, compute_dtype=None):
    """One-time parameter prep (amortized across forward calls): optional cast,
    pad the dictionary dim to a tile multiple, precompute decoder column norms."""
    D, F = w_enc.shape
    assert w_dec.shape == (F, D)
    if compute_dtype is not None:
        w_enc = w_enc.astype(compute_dtype)
        w_dec = w_dec.astype(compute_dtype)

    if bf is None:
        # big tiles on 128-MiB VMEM parts (v5e/v6e), smaller on 64-MiB v7x
        bf = 1024 if _vmem_capacity_bytes() > (96 << 20) else 512
    bf = max(128, _round_up(min(bf, _round_up(F, 128)), 128))
    Fp = _round_up(F, bf)

    b_enc = jnp.asarray(b_enc).reshape(1, F)
    b_dec = jnp.asarray(b_dec).reshape(1, D)
    if Fp != F:
        w_enc = jnp.pad(w_enc, ((0, 0), (0, Fp - F)))
        b_enc = jnp.pad(b_enc, ((0, 0), (0, Fp - F)))
        w_dec = jnp.pad(w_dec, ((0, Fp - F), (0, 0)))

    # torch: decoder.weight.norm(dim=0) == row-norm of W_dec in this layout.
    col_norm = jnp.sqrt(
        jnp.sum(w_dec.astype(jnp.float32) ** 2, axis=1))[None, :]   # (1, Fp)

    return SAEParams(w_enc, b_enc, w_dec, b_dec, col_norm, int(F), int(bf))


def _make_sae_kernel(with_features: bool, acc_is_output: bool):
    """Kernel factory.  grid = (batch_tiles, F_tiles); F axis is the reduction."""

    def kernel(*refs):
        if with_features:
            x_ref, we_ref, be_ref, cn_ref, wd_ref, bd_ref = refs[:6]
            out = refs[6:]
            xhat_ref, f_ref = out[0], out[1]
            rest = out[2:]
        else:
            x_ref, we_ref, be_ref, wd_ref, bd_ref = refs[:5]
            cn_ref, f_ref = None, None
            out = refs[5:]
            xhat_ref = out[0]
            rest = out[1:]
        acc_ref = xhat_ref if acc_is_output else rest[0]

        j = pl.program_id(1)

        @pl.when(j == 0)
        def _init():
            # fold the decoder bias into the accumulator init
            acc_ref[...] = jnp.broadcast_to(
                bd_ref[...].astype(acc_ref.dtype), acc_ref.shape)

        # encode slice: relu(x @ W_enc[:, j-tile] + b_enc[j-tile]) in f32
        pre = jnp.dot(x_ref[...], we_ref[...],
                      preferred_element_type=jnp.float32)
        f = jnp.maximum(pre + be_ref[...].astype(jnp.float32), 0.0)  # (bm, bf)

        if with_features:
            # scaled feature output; col_norm is a precomputed (1, bf) f32 input
            f_ref[...] = (f * cn_ref[...]).astype(f_ref.dtype)

        # partial decode: accumulate f_tile @ W_dec[j-tile]
        acc_ref[...] += jnp.dot(
            f.astype(wd_ref.dtype), wd_ref[...],
            preferred_element_type=jnp.float32).astype(acc_ref.dtype)

        if not acc_is_output:
            @pl.when(j == pl.num_programs(1) - 1)
            def _finish():
                xhat_ref[...] = acc_ref[...].astype(xhat_ref.dtype)

    return kernel


def autoencoder_new_forward(x, params: SAEParams, output_features=False, *, bm=None):
    """x: (B, D).  params: prepared via prepare_sae_params."""
    B, D = x.shape
    assert params.w_enc.shape[0] == D
    F = params.dict_size
    bf = params.bf
    Fp = params.w_enc.shape[1]
    dt = x.dtype
    out_dt = dt
    with_features = bool(output_features)
    acc_is_output = (jnp.dtype(dt) == jnp.dtype(jnp.float32))

    vmem_cap = _vmem_capacity_bytes()
    budget = int(vmem_cap * 0.8)

    # ---- batch-tile selection ------------------------------------------------
    user_bm = bm is not None
    if bm is None:
        # bm sets the arithmetic intensity (FLOPs per streamed weight byte);
        # ~512 is at/near the HBM<->MXU crossover across v5e/v6e/v7x.
        bm = 512
    bm = max(8, _round_up(min(bm, _round_up(B, 8)), 8))

    if not user_bm:
        ncores = _num_tensorcores()
        if ncores > 1 and B >= 8 * ncores and _round_up(B, bm) // bm < ncores:
            # keep every TensorCore busy on multi-TC chips (v7x)
            bm = max(8, _round_up(-(-B // ncores), 8))

    def est_for(bm_):
        est = 0
        est += 2 * _block_bytes(bm_, D, dt)                       # x tile
        est += 2 * _block_bytes(D, bf, params.w_enc.dtype)        # W_enc tile
        est += 2 * _block_bytes(1, bf, params.b_enc.dtype)        # b_enc tile
        est += 2 * _block_bytes(bf, D, params.w_dec.dtype)        # W_dec tile
        est += 2 * _block_bytes(1, D, params.b_dec.dtype)         # b_dec
        est += 2 * _block_bytes(bm_, D, out_dt)                   # x_hat tile
        if with_features:
            est += 2 * _block_bytes(1, bf, jnp.float32)           # col_norm tile
            est += 2 * _block_bytes(bm_, bf, out_dt)              # f tile
        if not acc_is_output:
            est += _block_bytes(bm_, D, jnp.float32)              # f32 accumulator
        return est

    while bm > 8 and est_for(bm) > budget:
        bm = max(8, _round_up(bm // 2, 8))
    est = est_for(bm)
    vmem_limit = min(max(int(est * 1.3) + (2 << 20), 32 << 20), int(vmem_cap * 0.9))

    Bp = _round_up(B, bm)
    if Bp != B:
        x = jnp.pad(x, ((0, Bp - B), (0, 0)))

    grid = (Bp // bm, Fp // bf)
    kernel = _make_sae_kernel(with_features, acc_is_output)

    in_specs = [
        pl.BlockSpec((bm, D), lambda i, j: (i, 0)),     # x (resident over j)
        pl.BlockSpec((D, bf), lambda i, j: (0, j)),     # W_enc (streamed)
        pl.BlockSpec((1, bf), lambda i, j: (0, j)),     # b_enc
    ]
    inputs = [x, params.w_enc, params.b_enc]
    if with_features:
        in_specs.append(pl.BlockSpec((1, bf), lambda i, j: (0, j)))   # col_norm
        inputs.append(params.col_norm)
    in_specs += [
        pl.BlockSpec((bf, D), lambda i, j: (j, 0)),     # W_dec (streamed)
        pl.BlockSpec((1, D), lambda i, j: (0, 0)),      # b_dec
    ]
    inputs += [params.w_dec, params.b_dec]

    if with_features:
        out_shape = (jax.ShapeDtypeStruct((Bp, D), out_dt),
                     jax.ShapeDtypeStruct((Bp, Fp), out_dt))
        out_specs = [pl.BlockSpec((bm, D), lambda i, j: (i, 0)),
                     pl.BlockSpec((bm, bf), lambda i, j: (i, j))]
    else:
        out_shape = jax.ShapeDtypeStruct((Bp, D), out_dt)
        out_specs = pl.BlockSpec((bm, D), lambda i, j: (i, 0))

    scratch_shapes = [] if acc_is_output else [pltpu.VMEM((bm, D), jnp.float32)]

    result = pl.pallas_call(
        kernel,
        out_shape=out_shape,
        grid_spec=pltpu.PrefetchScalarGridSpec(
            num_scalar_prefetch=0,
            grid=grid,
            in_specs=in_specs,
            out_specs=out_specs,
            scratch_shapes=scratch_shapes),
        compiler_params=pltpu.CompilerParams(
            dimension_semantics=("parallel", "arbitrary"),
            vmem_limit_bytes=vmem_limit),
    )(*inputs)

    if with_features:
        xhat, f_scaled = result
        return xhat[:B], f_scaled[:B, :F]
    return result[:B]


def init_autoencoder_new_params(key, activation_dim, dict_size, dtype=jnp.float32):
    """Deterministic re-implementation of AutoEncoderNew.__init__ weight init."""
    w = jax.random.normal(key, (activation_dim, dict_size), dtype=jnp.float32)
    w = w / jnp.linalg.norm(w, axis=0, keepdims=True) * 0.1
    # torch: encoder.weight = w.T (F, D); decoder.weight = w (D, F)
    # kernel layout: W_enc = encoder.weight.T = w   -> (D, F)
    #                W_dec = decoder.weight.T = w.T -> (F, D)
    w_enc = w.astype(dtype)
    w_dec = w.T.astype(dtype)
    b_enc = jnp.zeros((1, dict_size), dtype=dtype)
    b_dec = jnp.zeros((1, activation_dim), dtype=dtype)
    return w_enc, b_enc, w_dec, b_dec


def _reference_forward(x, w_enc, b_enc, w_dec, b_dec):
    x = x.astype(jnp.float32)
    w_enc = w_enc.astype(jnp.float32)
    w_dec = w_dec.astype(jnp.float32)
    b_enc = b_enc.astype(jnp.float32)
    b_dec = b_dec.astype(jnp.float32)
    f = jnp.maximum(x @ w_enc + b_enc, 0.0)
    xhat = f @ w_dec + b_dec
    f_scaled = f * jnp.sqrt(jnp.sum(w_dec * w_dec, axis=1))[None, :]
    return xhat, f_scaled


# TODO(synk): from_pretrained (torch checkpoint loading) is host-side I/O with no
# Pallas equivalent; load weights externally and pass them to prepare_sae_params.

if __name__ == "__main__":
    # Small shapes that still exercise batch padding (40 -> 48), F padding
    # (320 -> 384), multiple batch tiles and multiple F tiles with accumulation.
    batch, activation_dim, dict_size = 40, 128, 320

    key = jax.random.PRNGKey(0)
    k_w, k_x = jax.random.split(key)
    w_enc, b_enc, w_dec, b_dec = init_autoencoder_new_params(
        k_w, activation_dim, dict_size)
    x = jax.random.normal(k_x, (batch, activation_dim), dtype=jnp.float32)

    ref_xhat, ref_f = _reference_forward(x, w_enc, b_enc, w_dec, b_dec)

    # ---- f32 path: accumulate directly into the output block (no scratch) ----
    params = prepare_sae_params(w_enc, b_enc, w_dec, b_dec, bf=128)

    x_hat, f_scaled = autoencoder_new_forward(
        x, params, output_features=True, bm=16)
    x_hat = jax.block_until_ready(x_hat)
    f_scaled = jax.block_until_ready(f_scaled)
    assert x_hat.shape == (batch, activation_dim)
    assert f_scaled.shape == (batch, dict_size)
    assert jnp.allclose(x_hat, ref_xhat, atol=1e-5, rtol=1e-5)
    assert jnp.allclose(f_scaled, ref_f, atol=1e-5, rtol=1e-5)

    # output_features=False path uses the dedicated kernel (no f output / scaling)
    x_hat_only = jax.block_until_ready(autoencoder_new_forward(x, params))
    assert x_hat_only.shape == (batch, activation_dim)
    assert jnp.allclose(x_hat_only, ref_xhat, atol=1e-5, rtol=1e-5)

    # ---- bf16 path: f32 VMEM scratch accumulator, bf16 streamed weights ------
    params_bf16 = prepare_sae_params(
        w_enc, b_enc, w_dec, b_dec, bf=128, compute_dtype=jnp.bfloat16)
    x_bf16 = x.astype(jnp.bfloat16)
    ref_xhat_b, ref_f_b = _reference_forward(
        x_bf16, params_bf16.w_enc[:, :dict_size], b_enc,
        params_bf16.w_dec[:dict_size], b_dec)

    xh_b, f_b = autoencoder_new_forward(
        x_bf16, params_bf16, output_features=True, bm=16)
    xh_b = jax.block_until_ready(xh_b)
    f_b = jax.block_until_ready(f_b)
    assert jnp.allclose(xh_b.astype(jnp.float32), ref_xhat_b, atol=5e-2, rtol=5e-2)
    assert jnp.allclose(f_b.astype(jnp.float32), ref_f_b, atol=5e-2, rtol=5e-2)

    xh_b_only = jax.block_until_ready(
        autoencoder_new_forward(x_bf16, params_bf16))
    assert jnp.allclose(xh_b_only.astype(jnp.float32), ref_xhat_b,
                        atol=5e-2, rtol=5e-2)

    print("KERNEL_OK")
</pallas_src>

<mosaic_0001>
module attributes {stable_mosaic.version = 11 : i64} {
  func.func @kernel(%arg0: i32, %arg1: i32, %arg2: memref<16x128xf32, #tpu.memory_space<vmem>>, %arg3: memref<128x128xf32, #tpu.memory_space<vmem>>, %arg4: memref<1x128xf32, #tpu.memory_space<vmem>>, %arg5: memref<1x128xf32, #tpu.memory_space<vmem>>, %arg6: memref<128x128xf32, #tpu.memory_space<vmem>>, %arg7: memref<1x128xf32, #tpu.memory_space<vmem>>, %arg8: memref<16x128xf32, #tpu.memory_space<vmem>>, %arg9: memref<16x128xf32, #tpu.memory_space<vmem>>) attributes {dimension_semantics = [#tpu.dimension_semantics<parallel>, #tpu.dimension_semantics<arbitrary>], iteration_bounds = array<i64: 3, 3>, scalar_prefetch = 0 : i64, scratch_operands = 0 : i64, tpu.core_type = #tpu.core_type<tc>, window_params = [{transform_indices = @transform_0, window_bounds = array<i64: 16, 128>}, {transform_indices = @transform_1, window_bounds = array<i64: 128, 128>}, {transform_indices = @transform_2, window_bounds = array<i64: 1, 128>}, {transform_indices = @transform_3, window_bounds = array<i64: 1, 128>}, {transform_indices = @transform_4, window_bounds = array<i64: 128, 128>}, {pipeline_mode = #tpu.pipeline_mode<synchronous>, transform_indices = @transform_5, window_bounds = array<i64: 1, 128>}, {transform_indices = @transform_6, window_bounds = array<i64: 16, 128>}, {transform_indices = @transform_7, window_bounds = array<i64: 16, 128>}]} {
    %c0_i32 = arith.constant 0 : i32
    %0 = arith.cmpi eq, %arg1, %c0_i32 : i32
    %1 = arith.extui %0 : i1 to i32
    %c0_i32_0 = arith.constant 0 : i32
    %2 = arith.cmpi ne, %1, %c0_i32_0 : i32
    scf.if %2 {
      %c0_18 = arith.constant 0 : index
      %c0_19 = arith.constant 0 : index
      %20 = vector.load %arg7[%c0_18, %c0_19] : memref<1x128xf32, #tpu.memory_space<vmem>>, vector<1x128xf32>
      %21 = vector.shape_cast %20 : vector<1x128xf32> to vector<1x128xf32>
      %22 = vector.broadcast %21 : vector<1x128xf32> to vector<16x128xf32>
      %c0_20 = arith.constant 0 : index
      %c0_21 = arith.constant 0 : index
      %23 = vector.load %arg8[%c0_20, %c0_21] : memref<16x128xf32, #tpu.memory_space<vmem>>, vector<16x128xf32>
      tpu.vector_store %arg8[%c0_20, %c0_21], %22 {strides = array<i32>} : memref<16x128xf32, #tpu.memory_space<vmem>>, vector<16x128xf32>,
    } else {
    }
    %c0 = arith.constant 0 : index
    %c0_1 = arith.constant 0 : index
    %3 = vector.load %arg2[%c0, %c0_1] : memref<16x128xf32, #tpu.memory_space<vmem>>, vector<16x128xf32>
    %c0_2 = arith.constant 0 : index
    %c0_3 = arith.constant 0 : index
    %4 = vector.load %arg3[%c0_2, %c0_3] : memref<128x128xf32, #tpu.memory_space<vmem>>, vector<128x128xf32>
    %cst = arith.constant dense<0.000000e+00> : vector<16x128xf32>
    %5 = tpu.matmul %3, %4, %cst {dimension_numbers = #tpu.dot_dimension_numbers<[1], [0], [0], [1], [0, 0, 1, 1], [], []>} : vector<16x128xf32>, vector<128x128xf32>, vector<16x128xf32> -> vector<16x128xf32>
    %c0_4 = arith.constant 0 : index
    %c0_5 = arith.constant 0 : index
    %6 = vector.load %arg4[%c0_4, %c0_5] : memref<1x128xf32, #tpu.memory_space<vmem>>, vector<1x128xf32>
    %7 = vector.broadcast %6 : vector<1x128xf32> to vector<16x128xf32>
    %8 = arith.addf %5, %7 : vector<16x128xf32>
    %cst_6 = arith.constant 0.000000e+00 : f32
    %9 = vector.broadcast %cst_6 : f32 to vector<16x128xf32>
    %10 = arith.maximumf %8, %9 : vector<16x128xf32>
    %c0_7 = arith.constant 0 : index
    %c0_8 = arith.constant 0 : index
    %11 = vector.load %arg5[%c0_7, %c0_8] : memref<1x128xf32, #tpu.memory_space<vmem>>, vector<1x128xf32>
    %12 = vector.broadcast %11 : vector<1x128xf32> to vector<16x128xf32>
    %13 = arith.mulf %10, %12 : vector<16x128xf32>
    %c0_9 = arith.constant 0 : index
    %c0_10 = arith.constant 0 : index
    %14 = vector.load %arg9[%c0_9, %c0_10] : memref<16x128xf32, #tpu.memory_space<vmem>>, vector<16x128xf32>
    tpu.vector_store %arg9[%c0_9, %c0_10], %13 {strides = array<i32>} : memref<16x128xf32, #tpu.memory_space<vmem>>, vector<16x128xf32>,
    %c0_11 = arith.constant 0 : index
    %c0_12 = arith.constant 0 : index
    %15 = vector.load %arg8[%c0_11, %c0_12] : memref<16x128xf32, #tpu.memory_space<vmem>>, vector<16x128xf32>
    %c0_13 = arith.constant 0 : index
    %c0_14 = arith.constant 0 : index
    %16 = vector.load %arg6[%c0_13, %c0_14] : memref<128x128xf32, #tpu.memory_space<vmem>>, vector<128x128xf32>
    %cst_15 = arith.constant dense<0.000000e+00> : vector<16x128xf32>
    %17 = tpu.matmul %10, %16, %cst_15 {dimension_numbers = #tpu.dot_dimension_numbers<[1], [0], [0], [1], [0, 0, 1, 1], [], []>} : vector<16x128xf32>, vector<128x128xf32>, vector<16x128xf32> -> vector<16x128xf32>
    %18 = arith.addf %15, %17 : vector<16x128xf32>
    %c0_16 = arith.constant 0 : index
    %c0_17 = arith.constant 0 : index
    %19 = vector.load %arg8[%c0_16, %c0_17] : memref<16x128xf32, #tpu.memory_space<vmem>>, vector<16x128xf32>
    tpu.vector_store %arg8[%c0_16, %c0_17], %18 {strides = array<i32>} : memref<16x128xf32, #tpu.memory_space<vmem>>, vector<16x128xf32>,
    return
  }
  func.func @transform_0(%arg0: i32, %arg1: i32) -> (i32, i32) {
    %c0_i32 = arith.constant 0 : i32
    %c0_i32_0 = arith.constant 0 : i32
    return %arg0, %c0_i32 : i32, i32
  }
  func.func @transform_1(%arg0: i32, %arg1: i32) -> (i32, i32) {
    %c0_i32 = arith.constant 0 : i32
    %c0_i32_0 = arith.constant 0 : i32
    return %c0_i32, %arg1 : i32, i32
  }
  func.func @transform_2(%arg0: i32, %arg1: i32) -> (i32, i32) {
    %c0_i32 = arith.constant 0 : i32
    %c0_i32_0 = arith.constant 0 : i32
    return %c0_i32, %arg1 : i32, i32
  }
  func.func @transform_3(%arg0: i32, %arg1: i32) -> (i32, i32) {
    %c0_i32 = arith.constant 0 : i32
    %c0_i32_0 = arith.constant 0 : i32
    return %c0_i32, %arg1 : i32, i32
  }
  func.func @transform_4(%arg0: i32, %arg1: i32) -> (i32, i32) {
    %c0_i32 = arith.constant 0 : i32
    %c0_i32_0 = arith.constant 0 : i32
    return %arg1, %c0_i32 : i32, i32
  }
  func.func @transform_5(%arg0: i32, %arg1: i32) -> (i32, i32) {
    %c0_i32 = arith.constant 0 : i32
    %c0_i32_0 = arith.constant 0 : i32
    %c0_i32_1 = arith.constant 0 : i32
    return %c0_i32, %c0_i32_0 : i32, i32
  }
  func.func @transform_6(%arg0: i32, %arg1: i32) -> (i32, i32) {
    %c0_i32 = arith.constant 0 : i32
    %c0_i32_0 = arith.constant 0 : i32
    return %arg0, %c0_i32 : i32, i32
  }
  func.func @transform_7(%arg0: i32, %arg1: i32) -> (i32, i32) {
    %c0_i32 = arith.constant 0 : i32
    return %arg0, %arg1 : i32, i32
  }
}

</mosaic_0001>

<bundles_post_ra>
// kernel: tpu_custom_call.1
= control target key start
LH: loop header
LB: loop body
LE: loop exit
PB: predicated region body
PF: predicated region fallthrough
CT: control target
= control target key end

     0   :  { %s2090_s0 = inlined_call_operand.hbm [shape: f32[48,128], index: 0, kind: input, shape index: {}]   ;;  %s2091_s1 = inlined_call_operand.hbm [shape: f32[128,384], index: 1, kind: input, shape index: {}]   ;;  %s2092_s2 = inlined_call_operand.vmem [shape: f32[1,384], index: 2, kind: input, shape index: {}]   ;;  %s2093_s3 = inlined_call_operand.vmem [shape: f32[1,384], index: 3, kind: input, shape index: {}]   ;;  %s2094_s4 = inlined_call_operand.hbm [shape: f32[384,128], index: 4, kind: input, shape index: {}]   ;;  %s2095_s5 = inlined_call_operand.vmem [shape: f32[1,128], index: 5, kind: input, shape index: {}]   ;;  %s2096_s6 = inlined_call_operand.hbm [shape: f32[48,128], index: 6, kind: output, shape index: {0}]   ;;  %s2097_s7 = inlined_call_operand.hbm [shape: f32[48,384], index: 7, kind: output, shape index: {1}]  }
   0x1   :  { %2125 = sst [smem:[#allocation29_spill]] %s2090_s0 }
   0x2   :  { %2126 = sst [smem:[#allocation30_spill]] %s2091_s1 }
   0x3   :  { %2127 = sst [smem:[#allocation31_spill]] %s2092_s2 }
   0x4   :  { %2128 = sst [smem:[#allocation32_spill]] %s2093_s3 }
   0x5   :  { %2129 = sst [smem:[#allocation33_spill]] %s2094_s4 }
   0x6   :  { %2130 = sst [smem:[#allocation34_spill]] %s2095_s5 }
   0x7   :  { %2131 = sst [smem:[#allocation35_spill]] %s2096_s6 }
   0x8   :  { %2132 = sst [smem:[#allocation36_spill]] %s2097_s7 }
   0x9   :  { %13 = vsyncpa [#allocation3], 0 }
   0xa   :  { %15 = vsyncpa [#allocation3 + $0x1], 0 }
   0xb   :  { %16 = vsyncpa [#allocation6], 0 }
   0xc   :  { %18 = vsyncpa [#allocation6 + $0x1], 0 }
   0xd   :  { %19 = vsyncpa [#allocation4], 0 }
   0xe   :  { %21 = vsyncpa [#allocation4 + $0x1], 0 }
   0xf   :  { %22 = vsyncpa [#allocation10], 0 }
  0x10   :  { %24 = vsyncpa [#allocation10 + $0x1], 0  ;;  %s1546_s24 = smov 0   ;;  %s1548_s25 = smov 0  }
  0x11   :  { %s1550_s26 = smov 0   ;;  %s1552_s27 = smov 0  }
  0x12   :  { %s1554_s28 = smov 0   ;;  %s1556_s29 = smov 0  }
  0x13   :  { %s1558_s30 = smov 0   ;;  %s1560_s8 = smov 0  }
  0x14   :  { %s1562_s9 = smov 0   ;;  %s1564_s10 = smov 0  }
  0x15   :  { %s1566_s11 = smov 0   ;;  %s1568_s12 = smov 0  }
  0x16   :  { %s1570_s13 = smov 0   ;;  %s1572_s14 = smov 0  }
  0x17 LB: > { %2133 = sst [smem:[#allocation15_spill]] %s1461_s29  ;;  %s2099_s15 = sadd.s32 1, %s1485_s12  ;;  %s1493_s14 = sphi %s1572_s14, %s30_s14   ;;  %s1489_s13 = sphi %s1570_s13, %s2201_s13   ;;  %s1485_s12 = sphi %s1568_s12, %s2200_s12   ;;  %s1481_s11 = sphi %s1566_s11, %s2199_s11   ;;  %s1477_s10 = sphi %s1564_s10, %s2198_s10   ;;  %s1473_s9 = sphi %s1562_s9, %s2197_s9   ;;  %s1469_s8 = sphi %s1560_s8, %s2196_s8   ;;  %s1465_s30 = sphi %s1558_s30, %s2207_s30   ;;  %s1461_s29 = sphi %s1556_s29, %s2194_s29   ;;  %s1457_s28 = sphi %s1554_s28, %s2206_s28   ;;  %s1453_s27 = sphi %s1552_s27, %s2205_s27   ;;  %s1449_s26 = sphi %s1550_s26, %s2204_s26   ;;  %s1445_s25 = sphi %s1548_s25, %s2203_s25   ;;  %s1441_s24 = sphi %s1546_s24, %s2202_s24  }
  0x18   : > { %2134 = sst [smem:[#allocation16_spill]] %s1469_s8  ;;  %p2103_p0 = scmp.eq.s32.totalorder %s1493_s14, 0 }
  0x19   : > { %2135 = sst [smem:[#allocation17_spill]] %s1473_s9  ;;  %p1620_p1 = scmp.ge.s32.totalorder %s2099_s15, 3 }
  0x1a   : > { %2136 = sst [smem:[#allocation18_spill]] %s1477_s10  ;;  %p82_p2 = scmp.ne.s32.totalorder %s1461_s29, %s1457_s28 }
  0x1b   : > { %2137 = sst [smem:[#allocation19_spill]] %s1481_s11  ;;  %p2102_p4 = scmp.lt.s32.totalorder %s1493_s14, 9 }
  0x1c   : > { %2138 = sst [smem:[#allocation20_spill]] %s1485_s12  ;;  %p84_p5 = por %p82_p2, %p2103_p0 }
  0x1d   : > { %2139 = sst [smem:[#allocation21_spill]] %s1489_s13  ;;  %s289_s18 = sand.u32 1, %s1493_s14  }
  0x1e   : > { %s291_s19 = sand.u32 1, %s1461_s29   ;;  %s877_s21 = sshll.u32 %s1485_s12, 7 }
  0x1f   : > { %s1634_s20 = sshll.u32 %s291_s19, 7  ;;  %s2141_s1 = sld [smem:[#allocation30_spill]] }
  0x20   : > { %s293_s17 = scalar_lea.vmem [#allocation5], %s1634_s20  ;;  %p1645_p6 = pnand %p2102_p4, %p84_p5 }
  0x21   : > { %s299_s15 = sshll.u32 %s293_s17, 4  ;;  %s1652_s19 = scalar_lea.sflag [#allocation6], %s289_s18  ;;  %s1649_s15 = int_to_ptr.vmem [resolvable:$true] %s299_s15 }
  0x22   : > { %p2110_p9 = pneg %p1645_p6 }
  0x25   : > { %s1640_s6 = scalar_lea.hbm %s2141_s1, %s877_s21  ;;  %s1226_s23 = scalar_lea.hbm %s2141_s1, 6144 }
  0x26   : > { %s1221_s21 = scalar_lea.hbm %s1640_s6, 2048  ;;  %p1227_p12 = scmp.lt.u32.totalorder %s1640_s6, %s2141_s1 }
  0x27   : > { %p1222_p8 = scmp.ne.s32.totalorder %s1640_s6, %s1221_s21  ;;  %p1228_p13 = scmp.lt.u32.totalorder %s1226_s23, %s1221_s21 }
  0x28   : > { %p1230_p5 = scmp.lt.u32.totalorder %s1221_s21, %s1640_s6 }
  0x29   : > { %p1224_p10 = pnand %p2110_p9, %p1222_p8  ;;  %p1229_p2 = por %p1228_p13, %p1227_p12 }
  0x2b   : > { %p1225_p11 = pneg %p1224_p10  ;;  %p1231_p4 = por %p1230_p5, %p1229_p2 }
  0x2d   : > { %p1232_p3 = pnand %p1231_p4, %p1225_p11 }
  0x2f   : > { %1235 = shalt.err (!%p1232_p3)
}
  0x30   : > { %s1236_s18 = scalar_lea.vmem %s1649_s15, 2048  ;;  %s1495_s17 = smov [#allocation5]  }
  0x31   : > { %p1237_p8 = scmp.ne.s32.totalorder %s1649_s15, %s1236_s18  ;;  %s1241_s22 = sshll.u32 %s1495_s17, 4  ;;  %s1242_s22 = int_to_ptr.vmem [resolvable:$false] %s1241_s22 }
  0x32   : > { %s1243_s5 = scalar_lea.vmem %s1242_s22, 4096  ;;  %p1244_p7 = scmp.lt.s32.totalorder %s1649_s15, %s1242_s22 }
  0x33   : > { %p1239_p10 = pnand %p1237_p8, %p2110_p9  ;;  %p1245_p12 = scmp.lt.s32.totalorder %s1243_s5, %s1236_s18 }
  0x35   : > { %p1240_p0 = pneg %p1239_p10  ;;  %p1246_p13 = por %p1245_p12, %p1244_p7 }
  0x37   : > { %p1247_p2 = pnand %p1246_p13, %p1240_p0 }
  0x39   : > { %1250 = shalt.err (!%p1247_p2)
}
  0x3a   : > { %s1496_s11 = smov 384   ;;  %s2104_s21 = smov 128  }
  0x3b   : > { %s2106_s23 = smov 8   ;;  %p340_p0 = scmp.lt.s32.totalorder %s1493_s14, 10 }
  0x3c   : > { %1090 = dma.hbm_to_vmem [thread:$0]  (!%p1645_p6), %s1640_s6, 2048, %s1649_s15, %s1652_s19, %s1496_s11, %s2104_s21, %s2106_s23  }
  0x3d   : > { %p2143_p3 = scmp.ge.s32.totalorder %s1493_s14, 1  ;;  %s1690_s17 = sadd.s32 4294967295, %s1493_s14  }
  0x3e   : > { %s870_s22 = sadd.s32 4294967294, %s1493_s14   ;;  %s2145_s5 = sadd.s32 1, %s1485_s12 }
  0x3f   : > { %p1685_p4 = pnand %p2143_p3, %p340_p0  ;;  %s2209_s5 = smov (%p1620_p1, %s2145_s5), 0 }
  0x40   : > { %2146 = sst [smem:[#allocation22_spill]] %s2209_s5  ;;  %s42_s6 = sadd.s32 1, %s1489_s13 }
  0x41   : > { %s2144_s18 = scalar_select %p1685_p4, 1, 0 }
  0x42   : > { %s49_s15 = sadd.s32 1, %s1473_s9  ;;  %s2211_s6 = smov (!%p1620_p1, %s42_s6), %s1489_s13 }
  0x43   : > { %p56_p7 = scmp.ne.s32.totalorder %s1473_s9, %s1469_s8  ;;  %p62_p11 = scmp.ne.s32.totalorder %s1469_s8, %s1465_s30 }
  0x44   : > { %p44_p5 = scmp.ge.s32.totalorder %s2211_s6, 3  ;;  %p63_p8 = scmp.eq.s32.totalorder %s1690_s17, 0 }
  0x45   : > { %p2147_p10 = scmp.eq.s32.totalorder %s1493_s14, 0  ;;  %s72_s21 = ssub.s32 %s1485_s12, %s2209_s5 }
  0x46   : > { %s2213_s6 = smov (%p44_p5, %s2211_s6), 0  ;;  %p1725_p1 = por %p63_p8, %p62_p11 }
  0x47   : > { %p1714_p12 = por %p2147_p10, %p56_p7  ;;  %2149 = sst [smem:[#allocation23_spill]] %s2213_s6 }
  0x48   : > { %s2150_s16 = scalar_select %p1725_p1, 1, 0 }
  0x49   : > { %p73_p13 = scmp.eq.s32.totalorder %s72_s21, 0  ;;  %s46_s23 = ssub.s32 %s1489_s13, %s2213_s6 }
  0x4a   : > { %p2151_p2 = scmp.ne.s32.totalorder %s1457_s28, %s1453_s27  ;;  %p47_p3 = scmp.eq.s32.totalorder %s46_s23, 0 }
  0x4b   : > { %p211_p5 = scmp.eq.s32.totalorder %s1690_s17, 8  ;;  %s2154_s5 = sadd.s32 1, %s1461_s29 }
  0x4c   : > { %p1734_p0 = por %p2151_p2, %p63_p8  ;;  %p217_p9 = scmp.eq.s32.totalorder %s870_s22, 8 }
  0x4d   : > { %s1742_s3 = scalar_select %p73_p13, %s1461_s29, %s2154_s5  }
  0x4e   : > { %s2152_s1 = scalar_select %p1734_p0, 1, 0 }
  0x4f   : > { %2155 = sst [smem:[#allocation25_spill]] %s1742_s3  ;;  %p1750_p10 = por %p211_p5, %p56_p7 }
  0x50   : > { %2153 = sst [smem:[#allocation24_spill]] %s2152_s1  ;;  %s225_s27 = sor.u32 %s72_s21, %s46_s23 }
  0x51   : > { %s1745_s2 = scalar_select %p47_p3, %s1473_s9, %s49_s15  }
  0x52   : > { %s2157_s10 = scalar_select %p1750_p10, 1, 0 }
  0x53   : > { %2156 = sst [smem:[#allocation26_spill]] %s1745_s2  ;;  %s228_s6 = sadd.s32 1, %s1449_s26 }
  0x54   : > { %p1758_p8 = por %p217_p9, %p62_p11  ;;  %p226_p13 = scmp.eq.s32.totalorder %s225_s27, 0 }
  0x55   : > { %p238_p2 = scmp.ne.s32.totalorder %s1449_s26, %s1445_s25  ;;  %p244_p3 = scmp.ne.s32.totalorder %s1445_s25, %s1441_s24 }
  0x56   : > { %s2158_s1 = scalar_select %p1758_p8, 1, 0 }
  0x57   : > { %s1767_s5 = scalar_select %p226_p13, %s1449_s26, %s228_s6  }
  0x58   : > { %2159 = sst [smem:[#allocation27_spill]] %s2158_s1  ;;  %p1769_p7 = por %p238_p2, %p211_p5 }
  0x59   : > { %2160 = sst [smem:[#allocation28_spill]] %s1767_s5  ;;  %p1773_p10 = por %p244_p3, %p217_p9 }
  0x5a   : > { %s2161_s15 = scalar_select %p1769_p7, 1, 0 }
  0x5b   : > { %s2162_s22 = scalar_select %p1773_p10, 1, 0 }
  0x5c   : > { %s268_s21 = sand.u32 1, %s1473_s9   ;;  %s900_s23 = sshll.u32 %s1489_s13, 8 }
  0x5d   : > { %s873_s2 = sshll.u32 %s268_s21, 4  ;;  %s2163_s0 = sld [smem:[#allocation29_spill]] }
  0x5e   : > { %s272_s6 = scalar_lea.vmem [#allocation2], %s873_s2  ;;  %p2164_p11 = scmp.lt.s32.totalorder %s1493_s14, 9 }
  0x5f   : > { %s279_s27 = sshll.u32 %s272_s6, 4  ;;  %s901_s13 = sshll.u32 %s1485_s12, 11  ;;  %s1792_s27 = int_to_ptr.vmem [resolvable:$true] %s279_s27 }
  0x60   : > { %p1788_p9 = pnand %p2164_p11, %p1714_p12  ;;  %s1795_s3 = scalar_lea.sflag [#allocation3], %s268_s21 }
  0x62   : > { %p1253_p13 = pneg %p1788_p9 }
  0x63   : > { %s1782_s1 = scalar_lea.hbm %s2163_s0, %s900_s23  ;;  %s1256_s23 = scalar_lea.hbm %s2163_s0, 768 }
  0x64   : > { %s1251_s29 = scalar_lea.hbm %s1782_s1, 256  ;;  %p1257_p12 = scmp.lt.u32.totalorder %s1782_s1, %s2163_s0 }
  0x65   : > { %p1252_p5 = scmp.ne.s32.totalorder %s1782_s1, %s1251_s29  ;;  %p1258_p11 = scmp.lt.u32.totalorder %s1256_s23, %s1251_s29 }
  0x66   : > { %p1260_p8 = scmp.lt.u32.totalorder %s1251_s29, %s1782_s1 }
  0x67   : > { %p1254_p2 = pnand %p1253_p13, %p1252_p5  ;;  %p1259_p10 = por %p1258_p11, %p1257_p12 }
  0x69   : > { %p1255_p3 = pneg %p1254_p2  ;;  %p1261_p7 = por %p1260_p8, %p1259_p10 }
  0x6b   : > { %p1262_p0 = pnand %p1261_p7, %p1255_p3 }
  0x6d   : > { %1265 = shalt.err (!%p1262_p0)
}
  0x6e   : > { %s1266_s21 = scalar_lea.vmem %s1792_s27, 256  ;;  %s1499_s2 = smov [#allocation2]  }
  0x6f   : > { %p1267_p5 = scmp.ne.s32.totalorder %s1792_s27, %s1266_s21  ;;  %s1271_s11 = sshll.u32 %s1499_s2, 4  ;;  %s1272_s11 = int_to_ptr.vmem [resolvable:$false] %s1271_s11 }
  0x70   : > { %s1273_s9 = scalar_lea.vmem %s1272_s11, 512  ;;  %p1274_p4 = scmp.lt.s32.totalorder %s1792_s27, %s1272_s11 }
  0x71   : > { %p1269_p2 = pnand %p1267_p5, %p1253_p13  ;;  %p1275_p12 = scmp.lt.s32.totalorder %s1273_s9, %s1266_s21 }
  0x73   : > { %p1270_p1 = pneg %p1269_p2  ;;  %p1276_p11 = por %p1275_p12, %p1274_p4 }
  0x75   : > { %p1277_p10 = pnand %p1276_p11, %p1270_p1 }
  0x77   : > { %1280 = shalt.err (!%p1277_p10)
}
  0x78   : > { %s2166_s29 = smov 8   ;;  %s2167_s23 = smov 128  }
  0x79   : > { %1087 = dma.hbm_to_vmem [thread:$0]  (!%p1788_p9), %s1782_s1, 256, %s1792_s27, %s1795_s3, %s2167_s23, %s2167_s23, %s2166_s29  }
  0x7a   : > { %s2168_s4 = sld [smem:[#allocation33_spill]]  ;;  %s325_s5 = scalar_lea.vmem [#allocation7], %s1634_s20 }
  0x7b   : > { %s332_s11 = sshll.u32 %s325_s5, 4  ;;  %p2169_p1 = pneg %p1645_p6  ;;  %s1834_s11 = int_to_ptr.vmem [resolvable:$true] %s332_s11 }
  0x80   : > { %s1831_s21 = scalar_lea.hbm %s2168_s4, %s901_s13  ;;  %s1286_s3 = scalar_lea.hbm %s2168_s4, 6144 }
  0x81   : > { %s1281_s9 = scalar_lea.hbm %s1831_s21, 2048  ;;  %p1287_p7 = scmp.lt.u32.totalorder %s1831_s21, %s2168_s4 }
  0x82   : > { %p1282_p4 = scmp.ne.s32.totalorder %s1831_s21, %s1281_s9  ;;  %p1288_p9 = scmp.lt.u32.totalorder %s1286_s3, %s1281_s9 }
  0x83   : > { %p1290_p3 = scmp.lt.u32.totalorder %s1281_s9, %s1831_s21 }
  0x84   : > { %p1284_p0 = pnand %p1282_p4, %p2169_p1  ;;  %p1289_p13 = por %p1288_p9, %p1287_p7 }
  0x86   : > { %p1285_p8 = pneg %p1284_p0  ;;  %p1291_p5 = por %p1290_p3, %p1289_p13 }
  0x88   : > { %p1292_p2 = pnand %p1291_p5, %p1285_p8 }
  0x8a   : > { %1295 = shalt.err (!%p1292_p2)
}
  0x8b   : > { %s1296_s20 = scalar_lea.vmem %s1834_s11, 2048  ;;  %p2170_p11 = pmov %p2169_p1 }
  0x8c   : > { %p1297_p12 = scmp.ne.s32.totalorder %s1834_s11, %s1296_s20  ;;  %s1500_s2 = smov [#allocation7]  }
  0x8d   : > { %s1301_s5 = sshll.u32 %s1500_s2, 4  ;;  %s1302_s5 = int_to_ptr.vmem [resolvable:$false] %s1301_s5 }
  0x8e   : > { %p1299_p10 = pnand %p1297_p12, %p2170_p11  ;;  %s1303_s1 = scalar_lea.vmem %s1302_s5, 4096 }
  0x8f   : > { %p1304_p1 = scmp.lt.s32.totalorder %s1834_s11, %s1302_s5  ;;  %p1305_p0 = scmp.lt.s32.totalorder %s1303_s1, %s1296_s20 }
  0x90   : > { %p1300_p4 = pneg %p1299_p10 }
  0x91   : > { %p1306_p7 = por %p1305_p0, %p1304_p1 }
  0x93   : > { %p1307_p9 = pnand %p1306_p7, %p1300_p4 }
  0x95   : > { %1310 = shalt.err (!%p1307_p9)
}
  0x96   : > { %1093 = dma.hbm_to_vmem [thread:$0]  (!%p1645_p6), %s1831_s21, 2048, %s1834_s11, %s1652_s19, %s2167_s23, %s2167_s23, %s2166_s29  }
  0x97   : > { %p2171_p8 = scmp.ne.s32.totalorder %s2144_s18, 0 }
  0x98   : > { %s1866_s9 = sand.u32 (!%p2171_p8), 1, %s1469_s8   ;;  %p2172_p13 = scmp.ne.s32.totalorder (!%p2171_p8), %s2150_s16, 0 }
  0x99   : > { %344 = sbr.rel (%p2171_p8) target bundleno = 668 (0x29c), region = 44  ;;  %s882_s27 = sshll.u32 (!%p2171_p8), %s1866_s9, 4 }
  0x9a   : > { %s347_s3 = scalar_lea.sflag (!%p2171_p8), [#allocation3], %s1866_s9  ;;  %s1870_s13 = scalar_lea.vmem (!%p2171_p8), [#allocation2], %s882_s27 }
  0xa0   : > { %1424 = dma.done.wait (%p2172_p13), %s347_s3, 256  }
  0xa1   : > { %1426 = vsyncadd (%p2172_p13), %s347_s3, 4294967040  ;;  %s2173_s7 = sld [smem:[#allocation24_spill]]  ;;  %s355_s19 = sand.u32 1, %s1690_s17  }
  0xa2   : > { %s357_s18 = sand.u32 1, %s1457_s28   ;;  %s356_s23 = scalar_lea.sflag [#allocation6], %s355_s19 }
  0xa3   : > { %s883_s29 = sshll.u32 %s357_s18, 7 }
  0xa4   : > { %s1878_s21 = scalar_lea.vmem [#allocation5], %s883_s29 }
  0xa7   : > { %p2174_p6 = scmp.ne.s32.totalorder %s2173_s7, 0 }
  0xa9   : > { %1428 = dma.done.wait (%p2174_p6), %s356_s23, 4096  }
  0xaa   : > { %1430 = vsyncadd (%p2174_p6), %s356_s23, 4294963200  ;;  %s2175_s11 = sld [smem:[#allocation18_spill]]  ;;  %s2122_s16 = sand.u32 1, %s1445_s25  }
  0xab   : > { %s886_s6 = sshll.u32 %s2122_s16, 4  ;;  %s2176_s5 = sld [smem:[#allocation31_spill]] }
  0xac   : > { %s2177_s7 = sld [smem:[#allocation32_spill]]  ;;  %s1899_s23 = scalar_lea.vmem [#allocation7], %s883_s29 }
  0xad   : > { %s1901_s0 = scalar_lea.vmem [#allocation8], %s882_s27  ;;  %s1903_s4 = scalar_lea.vmem [#allocation9], %s886_s6 }
  0xb0   : > { %p421_p3 = scmp.lt.s32.totalorder %s2175_s11, 2  ;;  %p887_p5 = scmp.ne.s32.totalorder %s2175_s11, 0 }
  0xb1   : > { %s2178_s8 = sld [smem:[#allocation34_spill]] (!%p887_p5) }
  0xb2   : > { %s1889_s20 = scalar_select %p421_p3, %s2175_s11, 2 }
  0xb3   : > { %433 = sbr.rel (%p887_p5) target bundleno = 186 (0xba), region = 60 }
  0xb4   : > { %s423_s1 = scalar_lea.vmem %s2176_s5, %s1889_s20  ;;  %s426_s18 = scalar_lea.vmem %s2177_s7, %s1889_s20 }
  0xb7   : > { %v888_v0 = vld [vmem:[%s2178_s8] ss:$0 sm:$0xff] (!%p887_p5) }
  0xb8   : > { %441 = vst [vmem:[%s1901_s0] sm:$0xff] (!%p887_p5), %v888_v0  ;;  %442 = vst [vmem:[%s1901_s0 + $0x8] sm:$0xff] (!%p887_p5), %v888_v0 }
  0xba PF: > { %v445_v1 = vld [vmem:[%s1878_s21] sm:$0xff]  ;;  %v446_v2 = vld [vmem:[%s1878_s21 + $0x8] sm:$0xff]  ;;  %v447_v3 = vld [vmem:[%s1878_s21 + $0x10] sm:$0xff]  ;;  %s2179_s8 = sld [smem:[#allocation19_spill]]  ;;  %s690_s5 = sshll.u32 %s1903_s4, 4  ;;  %s1965_s5 = int_to_ptr.vmem [resolvable:$true] %s690_s5 }
  0xbb   : > { %v1009_v4 = vpack.c.bf16 %v446_v2, %v445_v1  ;;  %v448_v5 = vld [vmem:[%s1878_s21 + $0x18] sm:$0xff]  ;;  %v449_v7 = vld [vmem:[%s1878_s21 + $0x20] sm:$0xff]  ;;  %v450_v8 = vld [vmem:[%s1878_s21 + $0x28] sm:$0xff]  ;;  %s2183_s19 = sld [smem:[#allocation36_spill]]  ;;  %s2184_s7 = sand.u32 1, %s1445_s25  }
  0xbc   : > { %v1013_v6 = vpack.c.bf16 %v448_v5, %v447_v3  ;;  %v1017_v9 = vpack.c.bf16 %v450_v8, %v449_v7  ;;  %v451_v10 = vld [vmem:[%s1878_s21 + $0x30] sm:$0xff]  ;;  %v452_v11 = vld [vmem:[%s1878_s21 + $0x38] sm:$0xff]  ;;  %v558_v13 = vld [vmem:[%s1899_s23] sm:$0xff]  ;;  %p2185_p12 = scmp.ne.s32.totalorder %s2161_s15, 0  ;;  %s1501_s12 = smov [#allocation9]  }
  0xbd   : > { %1010 = vmatprep.subr.bf16.mxu0 %v1009_v4  ;;  %v443_v12 = vld [vmem:[%s1870_s13] sm:$0xff]  ;;  %v559_v14 = vld [vmem:[%s1899_s23 + $0x8] sm:$0xff]  ;;  %v561_v17 = vld [vmem:[%s1899_s23 + $0x18] sm:$0xff]  ;;  %v1021_v21 = vpack.c.bf16 %v452_v11, %v451_v10 }
  0xbe   : > { %1012 = vmatpush3.bf16.msra.mxu0 %v1009_v4  ;;  %971 = vmatprep.mubr.f32.mxu0 %v443_v12  ;;  %v560_v15 = vld [vmem:[%s1899_s23 + $0x10] sm:$0xff]  ;;  %v1041_v16 = vpack.c.bf16 %v559_v14, %v558_v13  ;;  %v562_v19 = vld [vmem:[%s1899_s23 + $0x20] sm:$0xff]  ;;  %v563_v20 = vld [vmem:[%s1899_s23 + $0x28] sm:$0xff] }
  0xbf   : > { %1014 = vmatprep.subr.bf16.mxu0 %v1013_v6  ;;  %v1045_v18 = vpack.c.bf16 %v561_v17, %v560_v15  ;;  %v453_v22 = vld [vmem:[%s1878_s21 + $0x40] sm:$0xff]  ;;  %v454_v23 = vld [vmem:[%s1878_s21 + $0x48] sm:$0xff]  ;;  %v1049_v24 = vpack.c.bf16 %v563_v20, %v562_v19  ;;  %v564_v25 = vld [vmem:[%s1899_s23 + $0x30] sm:$0xff] }
  0xc0   : > { %1042 = vmatprep.subr.bf16.mxu1 %v1041_v16  ;;  %v565_v26 = vld [vmem:[%s1899_s23 + $0x38] sm:$0xff]  ;;  %v1025_v27 = vpack.c.bf16 %v454_v23, %v453_v22  ;;  %v455_v28 = vld [vmem:[%s1878_s21 + $0x50] sm:$0xff]  ;;  %v566_v31 = vld [vmem:[%s1899_s23 + $0x40] sm:$0xff]  ;;  %s1073_s6 = smul.u32 6, %s2179_s8 }
  0xc1   : > { %1044 = vmatpush3.bf16.msra.mxu1 %v1041_v16  ;;  %v456_v29 = vld [vmem:[%s1878_s21 + $0x58] sm:$0xff]  ;;  %v1053_v30 = vpack.c.bf16 %v565_v26, %v564_v25  ;;  %v567_v32 = vld [vmem:[%s1899_s23 + $0x48] sm:$0xff]  ;;  %v457_v34 = vld [vmem:[%s1878_s21 + $0x60] sm:$0xff] }
  0xc2   : > { %1016 = vmatpush3.bf16.msra.mxu0 %v1013_v6  ;;  %1046 = vmatprep.subr.bf16.mxu1 %v1045_v18  ;;  %v1029_v33 = vpack.c.bf16 %v456_v29, %v455_v28  ;;  %v458_v35 = vld [vmem:[%s1878_s21 + $0x68] sm:$0xff]  ;;  %v1057_v36 = vpack.c.bf16 %v567_v32, %v566_v31  ;;  %v568_v37 = vld [vmem:[%s1899_s23 + $0x50] sm:$0xff]  ;;  %v569_v38 = vld [vmem:[%s1899_s23 + $0x58] sm:$0xff] }
  0xc3   : > { %1018 = vmatprep.subr.bf16.mxu0 %v1017_v9  ;;  %v1033_v39 = vpack.c.bf16 %v458_v35, %v457_v34  ;;  %v459_v40 = vld [vmem:[%s1878_s21 + $0x70] sm:$0xff]  ;;  %v460_v41 = vld [vmem:[%s1878_s21 + $0x78] sm:$0xff]  ;;  %v1061_v42 = vpack.c.bf16 %v569_v38, %v568_v37  ;;  %v570_v43 = vld [vmem:[%s1899_s23 + $0x60] sm:$0xff]  ;;  %s2181_s21 = sld [smem:[#allocation18_spill]] }
  0xc4   : > { %v571_v44 = vld [vmem:[%s1899_s23 + $0x68] sm:$0xff]  ;;  %v1037_v45 = vpack.c.bf16 %v460_v41, %v459_v40  ;;  %v572_v48 = vld [vmem:[%s1899_s23 + $0x70] sm:$0xff]  ;;  %v573_v49 = vld [vmem:[%s1899_s23 + $0x78] sm:$0xff]  ;;  %s1311_s23 = scalar_lea.vmem %s1965_s5, 256 }
  0xc5   : > { %1048 = vmatpush3.bf16.msra.mxu1 %v1045_v18  ;;  %v1065_v46 = vpack.c.bf16 %v571_v44, %v570_v43  ;;  %v444_v47 = vld [vmem:[%s1870_s13 + $0x8] sm:$0xff]  ;;  %v1069_v50 = vpack.c.bf16 %v573_v49, %v572_v48  ;;  %v889_v51 = vld [vmem:[%s423_s1] ss:$0 sm:$0xff]  ;;  %p1312_p2 = scmp.ne.s32.totalorder %s1965_s5, %s1311_s23 }
  0xc6   : > { %1020 = vmatpush3.bf16.msra.mxu0 %v1017_v9  ;;  %1050 = vmatprep.subr.bf16.mxu1 %v1049_v24  ;;  %v890_v55 = vld [vmem:[%s426_s18] ss:$0 sm:$0xff]  ;;  %s1969_s18 = scalar_lea.sflag [#allocation10], %s2184_s7 }
  0xc7   : > { %1022 = vmatprep.subr.bf16.mxu0 %v1021_v21  ;;  %p1313_p11 = pnand %p1312_p2, %p2185_p12 }
  0xc9   : > { %1052 = vmatpush3.bf16.msra.mxu1 %v1049_v24  ;;  %s687_s17 = sadd.s32 %s2181_s21, %s1073_s6  ;;  %p1314_p10 = pneg %p1313_p11 }
  0xca   : > { %1024 = vmatpush3.bf16.msra.mxu0 %v1021_v21  ;;  %1054 = vmatprep.subr.bf16.mxu1 %v1053_v30  ;;  %s897_s2 = sshll.u32 %s687_s17, 7 }
  0xcb   : > { %1026 = vmatprep.subr.bf16.mxu0 %v1025_v27  ;;  %s1963_s20 = scalar_lea.hbm %s2183_s19, %s897_s2 }
  0xcd   : > { %1056 = vmatpush3.bf16.msra.mxu1 %v1053_v30 }
  0xce   : > { %1028 = vmatpush3.bf16.msra.mxu0 %v1025_v27  ;;  %1058 = vmatprep.subr.bf16.mxu1 %v1057_v36 }
  0xcf   : > { %1030 = vmatprep.subr.bf16.mxu0 %v1029_v33 }
  0xd1   : > { %1060 = vmatpush3.bf16.msra.mxu1 %v1057_v36 }
  0xd2   : > { %1032 = vmatpush3.bf16.msra.mxu0 %v1029_v33  ;;  %1062 = vmatprep.subr.bf16.mxu1 %v1061_v42 }
  0xd3   : > { %1034 = vmatprep.subr.bf16.mxu0 %v1033_v39 }
  0xd5   : > { %1064 = vmatpush3.bf16.msra.mxu1 %v1061_v42 }
  0xd6   : > { %1036 = vmatpush3.bf16.msra.mxu0 %v1033_v39  ;;  %1066 = vmatprep.subr.bf16.mxu1 %v1065_v46 }
  0xd7   : > { %1038 = vmatprep.subr.bf16.mxu0 %v1037_v45 }
  0xd9   : > { %1068 = vmatpush3.bf16.msra.mxu1 %v1065_v46 }
  0xda   : > { %1040 = vmatpush3.bf16.msra.mxu0 %v1037_v45  ;;  %1070 = vmatprep.subr.bf16.mxu1 %v1069_v50 }
  0xdd   : > { %972 = vmatmul.mubr.f32.vlgmr.msra.gmra.mrb[0].mxu0 %v444_v47  ;;  %1072 = vmatpush3.bf16.msra.mxu1 %v1069_v50 }
 0x1b0   : > { %v973_v52 = vpop.f32.mrb[0].mxu0 }
 0x1b1   : > { %v540_v53 = vadd.f32 %v973_v52, %v889_v51  ;;  %v534_v54 = vpop.f32.mrb[1].mxu0 }
 0x1b2   : > { %v535_v56 = vadd.f32 %v889_v51, %v534_v54 }
 0x1b3   : > { %v544_v57 = vmax.f32 %v540_v53, 0.0 }
 0x1b4   : > { %v543_v58 = vmax.f32 %v535_v56, 0.0 }
 0x1b5   : > { %v553_v59 = vmul.f32 %v890_v55, %v544_v57 }
 0x1b6   : > { %v552_v60 = vmul.f32 %v890_v55, %v543_v58  ;;  %1006 = vmatprep.mubr.f32.mxu1 %v543_v58 }
 0x1b7   : > { %555 = vst [vmem:[%s1903_s4 + $0x8] sm:$0xff] %v553_v59  ;;  %1007 = vmatmul.mubr.f32.vlgmr.msra.gmra.mrb[0].mxu1 %v544_v57 }
 0x1b8   : > { %554 = vst [vmem:[%s1903_s4] sm:$0xff] %v552_v60  ;;  %s1315_s4 = sshll.u32 %s1501_s12, 4  ;;  %s1316_s4 = int_to_ptr.vmem [resolvable:$false] %s1315_s4 }
 0x1b9   : > { %s1317_s27 = scalar_lea.vmem %s1316_s4, 512  ;;  %p1318_p4 = scmp.lt.s32.totalorder %s1965_s5, %s1316_s4 }
 0x1ba   : > { %p1319_p1 = scmp.lt.s32.totalorder %s1317_s27, %s1311_s23 }
 0x1bc   : > { %p1320_p0 = por %p1319_p1, %p1318_p4 }
 0x1be   : > { %p1321_p7 = pnand %p1320_p0, %p1314_p10 }
 0x1c0   : > { %1324 = shalt.err (!%p1321_p7)
}
 0x1c1   : > { %s1325_s29 = scalar_lea.hbm %s1963_s20, 256  ;;  %s1329_s11 = scalar_lea.hbm %s2183_s19, 2304 }
 0x1c2   : > { %p1326_p9 = scmp.ne.s32.totalorder %s1963_s20, %s1325_s29  ;;  %p1330_p6 = scmp.lt.u32.totalorder %s1963_s20, %s2183_s19 }
 0x1c3   : > { %p1331_p3 = scmp.lt.u32.totalorder %s1329_s11, %s1325_s29  ;;  %p1333_p2 = scmp.lt.u32.totalorder %s1325_s29, %s1963_s20 }
 0x1c4   : > { %p1327_p8 = pnand %p1326_p9, %p2185_p12 }
 0x1c5   : > { %p1332_p5 = por %p1331_p3, %p1330_p6 }
 0x1c6   : > { %p1328_p13 = pneg %p1327_p8 }
 0x1c7   : > { %p1334_p11 = por %p1333_p2, %p1332_p5 }
 0x1c9   : > { %p1335_p10 = pnand %p1334_p11, %p1328_p13 }
 0x1cb   : > { %1338 = shalt.err (!%p1335_p10)
}
 0x1cc   : > { %s1502_s17 = smov 128   ;;  %s1503_s2 = smov 384   ;;  %v557_v61 = vld [vmem:[%s1901_s0 + $0x8] sm:$0xff]  ;;  %v556_v62 = vld [vmem:[%s1901_s0] sm:$0xff] }
 0x1cd   : > { %s1504_s1 = smov 8   ;;  %s902_s3 = sshll.u32 %s2179_s8, 8 }
 0x1ce   : > { %1081 = dma.vmem_to_hbm [thread:$0]  (%p2185_p12), %s1965_s5, 256, %s1963_s20, %s1969_s18, %s1502_s17, %s1503_s2, %s1504_s1  }
 0x1cf   : > { %s672_s7 = sshll.u32 %s1901_s0, 4  ;;  %s2186_s4 = sld [smem:[#allocation35_spill]]  ;;  %s2004_s7 = int_to_ptr.vmem [resolvable:$true] %s672_s7 }
 0x1d0   : > { %s654_s15 = scalar_lea.sflag [#allocation4], %s1866_s9  ;;  %s1339_s5 = scalar_lea.vmem %s2004_s7, 256 }
 0x1d1   : > { %p1340_p12 = scmp.ne.s32.totalorder %s2004_s7, %s1339_s5  ;;  %p2187_p4 = scmp.ne.s32.totalorder %s2157_s10, 0 }
 0x1d2   : > { %s1505_s8 = smov [#allocation8]  }
 0x1d3   : > { %p1341_p1 = pnand %p1340_p12, %p2187_p4  ;;  %s1343_s20 = sshll.u32 %s1505_s8, 4  ;;  %s1344_s20 = int_to_ptr.vmem [resolvable:$false] %s1343_s20 }
 0x1d4   : > { %s1345_s18 = scalar_lea.vmem %s1344_s20, 512  ;;  %p1346_p7 = scmp.lt.s32.totalorder %s2004_s7, %s1344_s20 }
 0x1d5   : > { %s2002_s27 = scalar_lea.hbm %s2186_s4, %s902_s3  ;;  %p1342_p0 = pneg %p1341_p1 }
 0x1d6   : > { %p1347_p9 = scmp.lt.s32.totalorder %s1345_s18, %s1339_s5 }
 0x1d8   : > { %p1348_p8 = por %p1347_p9, %p1346_p7 }
 0x1da   : > { %p1349_p13 = pnand %p1348_p8, %p1342_p0 }
 0x28a   : > { %v1008_v63 = vpop.f32.mrb[0].mxu1 }
 0x28b   : > { %v650_v0 = vadd.f32 %v1008_v63, %v557_v61  ;;  %v640_v1 = vpop.f32.mrb[1].mxu1 }
 0x28c   : > { %v649_v2 = vadd.f32 %v640_v1, %v556_v62 }
 0x28d   : > { %652 = vst [vmem:[%s1901_s0 + $0x8] sm:$0xff] %v650_v0 }
 0x28e   : > { %651 = vst [vmem:[%s1901_s0] sm:$0xff] %v649_v2 }
 0x28f   : > { %1352 = shalt.err (!%p1349_p13)
}
 0x290   : > { %s1353_s0 = scalar_lea.hbm %s2002_s27, 256  ;;  %s1357_s13 = scalar_lea.hbm %s2186_s4, 768 }
 0x291   : > { %p1354_p6 = scmp.ne.s32.totalorder %s2002_s27, %s1353_s0  ;;  %p1358_p2 = scmp.lt.u32.totalorder %s2002_s27, %s2186_s4 }
 0x292   : > { %p1359_p11 = scmp.lt.u32.totalorder %s1357_s13, %s1353_s0  ;;  %p1361_p12 = scmp.lt.u32.totalorder %s1353_s0, %s2002_s27 }
 0x293   : > { %p1355_p3 = pnand %p1354_p6, %p2187_p4 }
 0x294   : > { %p1360_p10 = por %p1359_p11, %p1358_p2 }
 0x295   : > { %p1356_p5 = pneg %p1355_p3 }
 0x296   : > { %p1362_p1 = por %p1361_p12, %p1360_p10 }
 0x298   : > { %p1363_p0 = pnand %p1362_p1, %p1356_p5 }
 0x29a   : > { %1366 = shalt.err (!%p1363_p0)
}
 0x29b   : > { %1080 = dma.vmem_to_hbm [thread:$0]  (%p2187_p4), %s2004_s7, 256, %s2002_s27, %s654_s15, %s1502_s17, %s1502_s17, %s1504_s1  }
 0x29c PF: > { %s2188_s6 = sld [smem:[#allocation27_spill]]  ;;  %p1102_p7 = scmp.ge.s32.totalorder %s1493_s14, 2 }
 0x29d   : > { %s705_s2 = sand.u32 1, %s1465_s30  }
 0x29e   : > { %s706_s3 = scalar_lea.sflag [#allocation4], %s705_s2 }
 0x2a2   : > { %p2189_p9 = scmp.ne.s32.totalorder %s2188_s6, 0 }
 0x2a4   : > { %p1095_p8 = pnand %p1102_p7, %p2189_p9 }
 0x2a6   : > { %1432 = dma.done.wait (!%p1095_p8), %s706_s3, 256  }
 0x2a7   : > { %1434 = vsyncadd (!%p1095_p8), %s706_s3, 4294967040  ;;  %s714_s10 = sand.u32 1, %s1441_s24   ;;  %p2190_p13 = scmp.ne.s32.totalorder %s2162_s22, 0 }
 0x2a8   : > { %s715_s9 = scalar_lea.sflag [#allocation10], %s714_s10 }
 0x2a9   : > { %p1098_p6 = pnand %p1102_p7, %p2190_p13 }
 0x2ab   : > { %1436 = dma.done.wait (!%p1098_p6), %s715_s9, 256  }
 0x2ac   : > { %1438 = vsyncadd (!%p1098_p6), %s715_s9, 4294967040  ;;  %s30_s14 = sadd.s32 1, %s1493_s14   ;;  %s2192_s30 = sld [smem:[#allocation28_spill]] }
 0x2ad   : > { %p2043_p4 = scmp.ge.s32.totalorder %s30_s14, 11   ;;  %s2193_s1 = sld [smem:[#allocation15_spill]] }
 0x2ae   : > { %s2194_s29 = sld [smem:[#allocation25_spill]]  ;;  %s2195_s7 = sld [smem:[#allocation16_spill]] }
 0x2af   : > { %s2196_s8 = sld [smem:[#allocation17_spill]]  ;;  %s2197_s9 = sld [smem:[#allocation26_spill]] }
 0x2b0   : > { %s2198_s10 = sld [smem:[#allocation20_spill]]  ;;  %s2199_s11 = sld [smem:[#allocation21_spill]] }
 0x2b1   : > { %s2200_s12 = sld [smem:[#allocation22_spill]]  ;;  %s2201_s13 = sld [smem:[#allocation23_spill]] }
 0x2b2   : > { %s2202_s24 = smov %s1445_s25  ;;  %s2203_s25 = smov %s1449_s26 }
 0x2b3   : > { %s2204_s26 = smov %s2192_s30  ;;  %s2205_s27 = smov %s1457_s28 }
 0x2b4   : > { %s2206_s28 = smov %s2193_s1  ;;  %s2207_s30 = smov %s2195_s7 }
 0x2b5   :  { %29 = sbr.rel (!%p2043_p4) target bundleno = 23 (0x17), region = 140 }
 0x2bc   :  { %720 = vsyncpa [#allocation3], 1 }
 0x2bd   :  { %722 = vsyncpa [#allocation3 + $0x1], 1 }
 0x2be   :  { %723 = vsyncpa [#allocation6], 1 }
 0x2bf   :  { %725 = vsyncpa [#allocation6 + $0x1], 1 }
 0x2c0   :  { %726 = vsyncpa [#allocation4], 1 }
 0x2c1   :  { %728 = vsyncpa [#allocation4 + $0x1], 1 }
 0x2c2   :  { %729 = vsyncpa [#allocation10], 1 }
 0x2c3   :  { %731 = vsyncpa [#allocation10 + $0x1], 1 }

</bundles_post_ra>
